<compile_context>
chip_gen: v7x
topology: tpu7x:2x2x1
jax: 0.10.0
libtpu: 0.0.40
codegen_flags: <defaults>
</compile_context>

<pallas_src>
import functools

import numpy as np
import jax
import jax.numpy as jnp
from jax.experimental import pallas as pl
from jax.experimental.pallas import tpu as pltpu


# ----------------------------------------------------------------------------
# Device / tiling helpers
# ----------------------------------------------------------------------------
def _round_up(x, m):
    return ((x + m - 1) // m) * m


def _cdiv(a, b):
    return (a + b - 1) // b


def _device_kind():
    try:
        return jax.devices()[0].device_kind.lower()
    except Exception:
        return ""


def _elementwise_dtype_for_device():
    kind = _device_kind()
    # bf16 VPU/EUP exists on v6e / v7x; v5e and older have no bf16 vector units.
    if "v6" in kind or "v7" in kind or "tpu7" in kind:
        return jnp.bfloat16
    return jnp.float32


def _vmem_budgets_for_device():
    """(tile VMEM budget, vmem_limit_bytes) per TPU generation."""
    kind = _device_kind()
    if "v7" in kind or "tpu7" in kind:          # 64 MiB physical VMEM per core
        return 40 << 20, 48 << 20
    return 80 << 20, 96 << 20                   # v5e / v6e: 128 MiB physical VMEM


def _choose_tiling(hw, batch, c, hd, elem_bytes, budget_bytes):
    """Pick (thw, n_hw, hw_pad): largest lane-dense HW tile under the VMEM
    budget, with at least 2 parallel grid steps for dual-core chips."""
    hw128 = _round_up(max(hw, 1), 128)
    # Per-pixel VMEM bytes: double-buffered x & out f32 blocks plus ~8 live
    # (Hd, THW) elementwise intermediates in the chain dtype.
    per_px = 4 * c * 4 + 8 * hd * elem_bytes
    cap = max(128, (budget_bytes // per_px) // 128 * 128)
    n_hw = max(1, _cdiv(hw128, cap))
    if batch * n_hw < 2 and hw128 > 128:
        n_hw = 2                                # keep both v7x TensorCores busy
    thw = _round_up(_cdiv(hw128, n_hw), 128)
    n_hw = _cdiv(hw128, thw)
    return thw, n_hw, thw * n_hw


# ----------------------------------------------------------------------------
# Kernel
# ----------------------------------------------------------------------------
def _cfg_denoiser_kernel(scale_ref,      # SMEM (2,)        [0.5*(1-s), 0.5*s]
                         x_ref,          # VMEM (1, C, THW) lane-dense pixels
                         w1s_ref,        # VMEM (1, Hd, C)  c_in-folded per-batch w1^T
                         shiftu_ref,     # VMEM (Hd, 1)     b1 + bc
                         shiftc_ref,     # VMEM (1, Hd, 1)  b1 + bc + wc.clip (per batch)
                         w2t_ref,        # VMEM (C, Hd)
                         b2t_ref,        # VMEM (C, 1)
                         o_ref,          # VMEM (1, C, THW)
                         *, elem_dtype):
    a_u = scale_ref[0].astype(elem_dtype)       # 0.5 * (1 - cond_scale)
    a_c = scale_ref[1].astype(elem_dtype)       # 0.5 * cond_scale

    # First 1x1 projection on the MXU: (Hd, C) @ (C, THW) -> (Hd, THW), f32 acc.
    h = jnp.dot(w1s_ref[0], x_ref[0], preferred_element_type=jnp.float32)

    # Elementwise chain in elem_dtype (bf16 on v6e/v7x, f32 on v5e).
    hb = h.astype(elem_dtype)
    zu = hb + shiftu_ref[...].astype(elem_dtype)            # uncond pre-activation
    zc = hb + shiftc_ref[0].astype(elem_dtype)              # cond pre-activation

    k0 = jnp.asarray(0.7978845608028654, elem_dtype)        # sqrt(2/pi)
    k1 = jnp.asarray(0.044715, elem_dtype)
    one = jnp.asarray(1.0, elem_dtype)
    tu = jnp.tanh(k0 * (zu + k1 * zu * zu * zu))            # EUP
    tc = jnp.tanh(k0 * (zc + k1 * zc * zc * zc))

    # GELU(z) = 0.5*z*(1+tanh(.)); CFG combine u + s*(c-u) fused BEFORE the
    # linear output projection with the 0.5 folded into a_u / a_c.
    h_mix = a_u * (zu * (one + tu)) + a_c * (zc * (one + tc))   # (Hd, THW)

    w2 = w2t_ref[...].astype(elem_dtype)                    # tiny (C, Hd) cast
    o_ref[0] = (jnp.dot(w2, h_mix, preferred_element_type=jnp.float32)
                + b2t_ref[...])                              # (C, THW) f32


# ----------------------------------------------------------------------------
# Wrapper
# ----------------------------------------------------------------------------
def cfg_denoise(x_nchw, sigma, clip_embed, params, cond_scale,
                elementwise_dtype=None):
    """x_nchw: [B,C,H,W] f32, sigma: [B] f32, clip_embed: [B,E] f32 -> [B,C,H,W]."""
    B, C, H, W = x_nchw.shape
    HW = H * W
    Hd = params["w1"].shape[1]

    elem_dtype = (_elementwise_dtype_for_device()
                  if elementwise_dtype is None else elementwise_dtype)
    elem_bytes = np.dtype(elem_dtype).itemsize
    tile_budget, vmem_limit = _vmem_budgets_for_device()
    thw, n_hw, hw_pad = _choose_tiling(HW, B, C, Hd, elem_bytes, tile_budget)

    # [B, C, HW]: pixels on the lane axis; reshape from NCHW is a free view.
    x_flat = x_nchw.reshape(B, C, HW).astype(jnp.float32)
    if hw_pad != HW:
        # Pad to a tile multiple so every store is unmasked & lane-dense.
        x_flat = jnp.pad(x_flat, ((0, 0), (0, 0), (0, hw_pad - HW)))

    # Batch-only work hoisted out of the per-tile body.
    c_in = jax.lax.rsqrt(sigma.astype(jnp.float32) ** 2 + 1.0)       # (B,)
    w1s = params["w1"].T[None, :, :] * c_in[:, None, None]           # (B, Hd, C)
    shift_u = (params["b1"] + params["bc"]).reshape(Hd, 1)           # (Hd, 1)
    shift_c = (clip_embed @ params["wc"]
               + params["bc"] + params["b1"]).reshape(B, Hd, 1)      # (B, Hd, 1)
    w2t = params["w2"].T                                             # (C, Hd)
    b2t = params["b2"].reshape(C, 1)                                 # (C, 1)

    # GELU 0.5 and CFG weights folded into two SMEM scalars (no recompile when
    # the guidance scale changes).
    s = jnp.float32(cond_scale)
    scale = jnp.stack([0.5 * (1.0 - s), 0.5 * s]).astype(jnp.float32)

    grid_spec = pltpu.PrefetchScalarGridSpec(
        num_scalar_prefetch=1,                  # [a_u, a_c] lands in SMEM
        grid=(B, n_hw),
        in_specs=[
            pl.BlockSpec((1, C, thw), lambda b, t, sc: (b, 0, t)),   # x
            pl.BlockSpec((1, Hd, C), lambda b, t, sc: (b, 0, 0)),    # c_in * w1^T
            pl.BlockSpec((Hd, 1), lambda b, t, sc: (0, 0)),          # b1 + bc
            pl.BlockSpec((1, Hd, 1), lambda b, t, sc: (b, 0, 0)),    # b1 + bc + wc.clip
            pl.BlockSpec((C, Hd), lambda b, t, sc: (0, 0)),          # w2^T
            pl.BlockSpec((C, 1), lambda b, t, sc: (0, 0)),           # b2
        ],
        out_specs=pl.BlockSpec((1, C, thw), lambda b, t, sc: (b, 0, t)),
    )

    out_flat = pl.pallas_call(
        functools.partial(_cfg_denoiser_kernel, elem_dtype=elem_dtype),
        out_shape=jax.ShapeDtypeStruct((B, C, hw_pad), jnp.float32),
        grid_spec=grid_spec,
        compiler_params=pltpu.CompilerParams(
            dimension_semantics=("parallel", "parallel"),   # batch & HW tiles
            vmem_limit_bytes=vmem_limit),
    )(scale, x_flat, w1s, shift_u, shift_c, w2t, b2t)

    return out_flat[:, :, :HW].reshape(B, C, H, W)


# ---------------------------------------------------------------------------
# Pure-JAX reference that literally mirrors the PyTorch CFGDenoiser.forward
# (concat -> inner model -> chunk -> guidance), used to validate the kernel.
# ---------------------------------------------------------------------------
def _gelu(x):
    c = jnp.asarray(0.7978845608028654, x.dtype)  # sqrt(2/pi)
    return 0.5 * x * (1.0 + jnp.tanh(c * (x + 0.044715 * x * x * x)))


def _inner_model_ref(x_nchw, sigma, clip, params):
    B, C, H, W = x_nchw.shape
    c_in = 1.0 / jnp.sqrt(sigma * sigma + 1.0)
    xf = jnp.transpose(x_nchw, (0, 2, 3, 1)).reshape(B, H * W, C) * c_in[:, None, None]
    h = xf @ params["w1"] + params["b1"]
    shift = clip @ params["wc"] + params["bc"]          # (B, Hd)
    h = _gelu(h + shift[:, None, :])
    out = h @ params["w2"] + params["b2"]
    return jnp.transpose(out.reshape(B, H, W, C), (0, 3, 1, 2))


def _cfg_ref(x, sigma, clip, params, cond_scale):
    x_in = jnp.concatenate([x, x], axis=0)
    sigma_in = jnp.concatenate([sigma, sigma], axis=0)
    clip_in = jnp.concatenate([jnp.zeros_like(clip), clip], axis=0)
    out = _inner_model_ref(x_in, sigma_in, clip_in, params)
    B = x.shape[0]
    uncond, cond = out[:B], out[B:]
    return uncond + (cond - uncond) * cond_scale


if __name__ == "__main__":
    B, C, H, W = 2, 4, 16, 16
    E, Hd = 64, 32
    cond_scale = 7.5

    key = jax.random.PRNGKey(0)
    k_x, k_s, k_c, k_w1, k_wc, k_w2, k_b1, k_bc, k_b2 = jax.random.split(key, 9)

    x = jax.random.normal(k_x, (B, C, H, W), jnp.float32)
    sigma = jax.random.uniform(k_s, (B,), jnp.float32, minval=0.1, maxval=5.0)
    clip_embed = jax.random.normal(k_c, (B, E), jnp.float32)

    params = {
        "w1": jax.random.normal(k_w1, (C, Hd), jnp.float32) * (1.0 / jnp.sqrt(C)),
        "b1": jax.random.normal(k_b1, (Hd,), jnp.float32) * 0.02,
        "wc": jax.random.normal(k_wc, (E, Hd), jnp.float32) * (1.0 / jnp.sqrt(E)),
        "bc": jax.random.normal(k_bc, (Hd,), jnp.float32) * 0.02,
        "w2": jax.random.normal(k_w2, (Hd, C), jnp.float32) * (1.0 / jnp.sqrt(Hd)),
        "b2": jax.random.normal(k_b2, (C,), jnp.float32) * 0.02,
    }

    ref = _cfg_ref(x, sigma, clip_embed, params, cond_scale)

    # Strict f32 check of the kernel algebra (runs on every TPU generation).
    out_f32 = jax.block_until_ready(
        cfg_denoise(x, sigma, clip_embed, params, cond_scale,
                    elementwise_dtype=jnp.float32))
    assert out_f32.shape == (B, C, H, W)
    assert jnp.allclose(out_f32, ref, atol=5e-4, rtol=5e-4), \
        float(jnp.max(jnp.abs(out_f32 - ref)))

    # Generation-default path (bf16 elementwise on v6e/v7x, f32 on v5e).
    auto_dtype = _elementwise_dtype_for_device()
    out_auto = jax.block_until_ready(
        cfg_denoise(x, sigma, clip_embed, params, cond_scale))
    rel_err = float(jnp.linalg.norm(out_auto - ref) / jnp.linalg.norm(ref))
    tol = 1e-4 if np.dtype(auto_dtype) == np.dtype(jnp.float32) else 3e-2
    assert rel_err < tol, rel_err

    print("KERNEL_OK")
</pallas_src>

<mosaic_0001>
module attributes {stable_mosaic.version = 11 : i64} {
  func.func @_cfg_denoiser_kernel(%arg0: i32, %arg1: i32, %arg2: memref<2xf32, #tpu.memory_space<smem>>, %arg3: memref<1x4x256xf32, #tpu.memory_space<vmem>>, %arg4: memref<1x32x4xf32, #tpu.memory_space<vmem>>, %arg5: memref<32x1xf32, #tpu.memory_space<vmem>>, %arg6: memref<1x32x1xf32, #tpu.memory_space<vmem>>, %arg7: memref<4x32xf32, #tpu.memory_space<vmem>>, %arg8: memref<4x1xf32, #tpu.memory_space<vmem>>, %arg9: memref<1x4x256xf32, #tpu.memory_space<vmem>>) attributes {dimension_semantics = [#tpu.dimension_semantics<parallel>, #tpu.dimension_semantics<parallel>], iteration_bounds = array<i64: 2, 1>, scalar_prefetch = 1 : i64, scratch_operands = 0 : i64, tpu.core_type = #tpu.core_type<tc>, window_params = [{transform_indices = @transform_0, window_bounds = array<i64: 1, 4, 256>}, {transform_indices = @transform_1, window_bounds = array<i64: 1, 32, 4>}, {pipeline_mode = #tpu.pipeline_mode<synchronous>, transform_indices = @transform_2, window_bounds = array<i64: 32, 1>}, {transform_indices = @transform_3, window_bounds = array<i64: 1, 32, 1>}, {pipeline_mode = #tpu.pipeline_mode<synchronous>, transform_indices = @transform_4, window_bounds = array<i64: 4, 32>}, {pipeline_mode = #tpu.pipeline_mode<synchronous>, transform_indices = @transform_5, window_bounds = array<i64: 4, 1>}, {transform_indices = @transform_6, window_bounds = array<i64: 1, 4, 256>}]} {
    %c0 = arith.constant 0 : index
    %0 = memref.load %arg2[%c0] : memref<2xf32, #tpu.memory_space<smem>>
    %c1 = arith.constant 1 : index
    %1 = memref.load %arg2[%c1] : memref<2xf32, #tpu.memory_space<smem>>
    %c0_0 = arith.constant 0 : index
    %c0_1 = arith.constant 0 : index
    %c0_2 = arith.constant 0 : index
    %2 = vector.load %arg4[%c0_0, %c0_1, %c0_2] : memref<1x32x4xf32, #tpu.memory_space<vmem>>, vector<1x32x4xf32>
    %3 = vector.shape_cast %2 : vector<1x32x4xf32> to vector<32x4xf32>
    %c0_3 = arith.constant 0 : index
    %c0_4 = arith.constant 0 : index
    %c0_5 = arith.constant 0 : index
    %4 = vector.load %arg3[%c0_3, %c0_4, %c0_5] : memref<1x4x256xf32, #tpu.memory_space<vmem>>, vector<1x4x256xf32>
    %5 = vector.shape_cast %4 : vector<1x4x256xf32> to vector<4x256xf32>
    %cst = arith.constant dense<0.000000e+00> : vector<32x256xf32>
    %6 = tpu.matmul %3, %5, %cst {dimension_numbers = #tpu.dot_dimension_numbers<[1], [0], [0], [1], [0, 0, 1, 1], [], []>} : vector<32x4xf32>, vector<4x256xf32>, vector<32x256xf32> -> vector<32x256xf32>
    %c0_6 = arith.constant 0 : index
    %c0_7 = arith.constant 0 : index
    %7 = vector.load %arg5[%c0_6, %c0_7] : memref<32x1xf32, #tpu.memory_space<vmem>>, vector<32x1xf32>
    %8 = vector.broadcast %7 : vector<32x1xf32> to vector<32x256xf32>
    %9 = arith.addf %6, %8 : vector<32x256xf32>
    %c0_8 = arith.constant 0 : index
    %c0_9 = arith.constant 0 : index
    %c0_10 = arith.constant 0 : index
    %10 = vector.load %arg6[%c0_8, %c0_9, %c0_10] : memref<1x32x1xf32, #tpu.memory_space<vmem>>, vector<1x32x1xf32>
    %11 = vector.shape_cast %10 : vector<1x32x1xf32> to vector<32x1xf32>
    %12 = vector.broadcast %11 : vector<32x1xf32> to vector<32x256xf32>
    %13 = arith.addf %6, %12 : vector<32x256xf32>
    %cst_11 = arith.constant 4.471500e-02 : f32
    %14 = vector.broadcast %cst_11 : f32 to vector<32x256xf32>
    %15 = arith.mulf %14, %9 : vector<32x256xf32>
    %16 = arith.mulf %15, %9 : vector<32x256xf32>
    %17 = arith.mulf %16, %9 : vector<32x256xf32>
    %18 = arith.addf %9, %17 : vector<32x256xf32>
    %cst_12 = arith.constant 0.797884583 : f32
    %19 = vector.broadcast %cst_12 : f32 to vector<32x256xf32>
    %20 = arith.mulf %19, %18 : vector<32x256xf32>
    %21 = math.tanh %20 : vector<32x256xf32>
    %cst_13 = arith.constant 4.471500e-02 : f32
    %22 = vector.broadcast %cst_13 : f32 to vector<32x256xf32>
    %23 = arith.mulf %22, %13 : vector<32x256xf32>
    %24 = arith.mulf %23, %13 : vector<32x256xf32>
    %25 = arith.mulf %24, %13 : vector<32x256xf32>
    %26 = arith.addf %13, %25 : vector<32x256xf32>
    %cst_14 = arith.constant 0.797884583 : f32
    %27 = vector.broadcast %cst_14 : f32 to vector<32x256xf32>
    %28 = arith.mulf %27, %26 : vector<32x256xf32>
    %29 = math.tanh %28 : vector<32x256xf32>
    %cst_15 = arith.constant 1.000000e+00 : f32
    %30 = vector.broadcast %cst_15 : f32 to vector<32x256xf32>
    %31 = arith.addf %30, %21 : vector<32x256xf32>
    %32 = arith.mulf %9, %31 : vector<32x256xf32>
    %33 = vector.broadcast %0 : f32 to vector<32x256xf32>
    %34 = arith.mulf %33, %32 : vector<32x256xf32>
    %cst_16 = arith.constant 1.000000e+00 : f32
    %35 = vector.broadcast %cst_16 : f32 to vector<32x256xf32>
    %36 = arith.addf %35, %29 : vector<32x256xf32>
    %37 = arith.mulf %13, %36 : vector<32x256xf32>
    %38 = vector.broadcast %1 : f32 to vector<32x256xf32>
    %39 = arith.mulf %38, %37 : vector<32x256xf32>
    %40 = arith.addf %34, %39 : vector<32x256xf32>
    %c0_17 = arith.constant 0 : index
    %c0_18 = arith.constant 0 : index
    %41 = vector.load %arg7[%c0_17, %c0_18] : memref<4x32xf32, #tpu.memory_space<vmem>>, vector<4x32xf32>
    %cst_19 = arith.constant dense<0.000000e+00> : vector<4x256xf32>
    %42 = tpu.matmul %41, %40, %cst_19 {dimension_numbers = #tpu.dot_dimension_numbers<[1], [0], [0], [1], [0, 0, 1, 1], [], []>} : vector<4x32xf32>, vector<32x256xf32>, vector<4x256xf32> -> vector<4x256xf32>
    %c0_20 = arith.constant 0 : index
    %c0_21 = arith.constant 0 : index
    %43 = vector.load %arg8[%c0_20, %c0_21] : memref<4x1xf32, #tpu.memory_space<vmem>>, vector<4x1xf32>
    %44 = vector.broadcast %43 : vector<4x1xf32> to vector<4x256xf32>
    %45 = arith.addf %42, %44 : vector<4x256xf32>
    %c0_22 = arith.constant 0 : index
    %c0_23 = arith.constant 0 : index
    %c0_24 = arith.constant 0 : index
    %46 = vector.load %arg9[%c0_22, %c0_23, %c0_24] : memref<1x4x256xf32, #tpu.memory_space<vmem>>, vector<1x4x256xf32>
    %47 = vector.shape_cast %46 : vector<1x4x256xf32> to vector<4x256xf32>
    %48 = vector.shape_cast %45 : vector<4x256xf32> to vector<1x4x256xf32>
    tpu.vector_store %arg9[%c0_22, %c0_23, %c0_24], %48 {strides = array<i32>} : memref<1x4x256xf32, #tpu.memory_space<vmem>>, vector<1x4x256xf32>,
    return
  }
  func.func @transform_0(%arg0: i32, %arg1: i32, %arg2: memref<2xf32, #tpu.memory_space<smem>>) -> (i32, i32, i32) {
    %c0_i32 = arith.constant 0 : i32
    %c0_i32_0 = arith.constant 0 : i32
    return %arg0, %c0_i32, %arg1 : i32, i32, i32
  }
  func.func @transform_1(%arg0: i32, %arg1: i32, %arg2: memref<2xf32, #tpu.memory_space<smem>>) -> (i32, i32, i32) {
    %c0_i32 = arith.constant 0 : i32
    %c0_i32_0 = arith.constant 0 : i32
    %c0_i32_1 = arith.constant 0 : i32
    return %arg0, %c0_i32, %c0_i32_0 : i32, i32, i32
  }
  func.func @transform_2(%arg0: i32, %arg1: i32, %arg2: memref<2xf32, #tpu.memory_space<smem>>) -> (i32, i32) {
    %c0_i32 = arith.constant 0 : i32
    %c0_i32_0 = arith.constant 0 : i32
    %c0_i32_1 = arith.constant 0 : i32
    return %c0_i32, %c0_i32_0 : i32, i32
  }
  func.func @transform_3(%arg0: i32, %arg1: i32, %arg2: memref<2xf32, #tpu.memory_space<smem>>) -> (i32, i32, i32) {
    %c0_i32 = arith.constant 0 : i32
    %c0_i32_0 = arith.constant 0 : i32
    %c0_i32_1 = arith.constant 0 : i32
    return %arg0, %c0_i32, %c0_i32_0 : i32, i32, i32
  }
  func.func @transform_4(%arg0: i32, %arg1: i32, %arg2: memref<2xf32, #tpu.memory_space<smem>>) -> (i32, i32) {
    %c0_i32 = arith.constant 0 : i32
    %c0_i32_0 = arith.constant 0 : i32
    %c0_i32_1 = arith.constant 0 : i32
    return %c0_i32, %c0_i32_0 : i32, i32
  }
  func.func @transform_5(%arg0: i32, %arg1: i32, %arg2: memref<2xf32, #tpu.memory_space<smem>>) -> (i32, i32) {
    %c0_i32 = arith.constant 0 : i32
    %c0_i32_0 = arith.constant 0 : i32
    %c0_i32_1 = arith.constant 0 : i32
    return %c0_i32, %c0_i32_0 : i32, i32
  }
  func.func @transform_6(%arg0: i32, %arg1: i32, %arg2: memref<2xf32, #tpu.memory_space<smem>>) -> (i32, i32, i32) {
    %c0_i32 = arith.constant 0 : i32
    %c0_i32_0 = arith.constant 0 : i32
    return %arg0, %c0_i32, %arg1 : i32, i32, i32
  }
}

</mosaic_0001>

<bundles_post_ra>
// kernel: tpu_custom_call.1
= control target key start
LH: loop header
LB: loop body
LE: loop exit
PB: predicated region body
PF: predicated region fallthrough
CT: control target
= control target key end

     0   :  { %s2073_s0 = inlined_call_operand.hbm [shape: f32[2], index: 0, kind: input, shape index: {}]   ;;  %s2074_s1 = inlined_call_operand.hbm [shape: f32[2,4,256], index: 1, kind: input, shape index: {}]   ;;  %s2075_s2 = inlined_call_operand.hbm [shape: f32[2,32,4], index: 2, kind: input, shape index: {}]   ;;  %s2076_s3 = inlined_call_operand.hbm [shape: f32[32,1], index: 3, kind: input, shape index: {}]   ;;  %s2077_s4 = inlined_call_operand.hbm [shape: f32[2,32,1], index: 4, kind: input, shape index: {}]   ;;  %s2078_s5 = inlined_call_operand.hbm [shape: f32[4,32], index: 5, kind: input, shape index: {}]   ;;  %s2079_s6 = inlined_call_operand.hbm [shape: f32[4,1], index: 6, kind: input, shape index: {}]   ;;  %s2080_s7 = inlined_call_operand.hbm [shape: f32[2,4,256], index: 7, kind: output, shape index: {}]  }
   0x1   :  { %2091 = sst [smem:[#allocation26_spill]] %s2074_s1  ;;  %s1200_s26 = scalar_lea.hbm %s2073_s0, 16 }
   0x2   :  { %2092 = sst [smem:[#allocation27_spill]] %s2076_s3  ;;  %p1201_p0 = scmp.ne.s32.totalorder %s2073_s0, %s1200_s26 }
   0x3   :  { %2093 = sst [smem:[#allocation28_spill]] %s2078_s5  ;;  %p1204_p1 = scmp.lt.u32.totalorder %s1200_s26, %s2073_s0 }
   0x5   :  { %p1206_p2 = pnand %p1204_p1, %p1201_p0 }
   0x7   :  { %1209 = shalt.err (!%p1206_p2)  }
   0x8   :  { %s1490_s8 = smov [#allocation3]  }
   0x9   :  { %13 = dma.hbm_to_smem %s2073_s0, 16, %s1490_s8, [#allocation2] }
   0xa   :  { %1436 = dma.done.wait [#allocation2], 16 }
   0xb   :  { %1437 = vsyncadd [#allocation2], 4294967280 }
   0xc   :  { %15 = sfence }
   0xd   :  { %16 = vsyncpa [#allocation5], 0 }
   0xe   :  { %18 = vsyncpa [#allocation5 + $0x1], 0 }
   0xf   :  { %19 = vsyncpa [#allocation8], 0 }
  0x10   :  { %21 = vsyncpa [#allocation8 + $0x1], 0 }
  0x11   :  { %22 = vsyncpa [#allocation11], 0 }
  0x12   :  { %24 = vsyncpa [#allocation11 + $0x1], 0 }
  0x13   :  { %25 = vsyncpa [#allocation14], 0 }
  0x14   :  { %26 = vsyncpa [#allocation6], 0 }
  0x15   :  { %28 = vsyncpa [#allocation6 + $0x1], 0  ;;  %s1554_s11 = smov 0   ;;  %s1556_s12 = smov 0  }
  0x16   :  { %s1558_s13 = smov 0   ;;  %s1560_s14 = smov 0  }
  0x17   :  { %s1562_s0 = smov 0   ;;  %s1564_s15 = smov 0  }
  0x18 LB: > { %2094 = sst [smem:[#allocation24_spill]] %s1468_s11  ;;  %s1585_s16 = sadd.s32 4294967295, %s1488_s15   ;;  %s1488_s15 = sphi %s1564_s15, %s34_s15   ;;  %s1484_s0 = sphi %s1562_s0, %s2129_s0   ;;  %s1480_s14 = sphi %s1560_s14, %s2128_s14   ;;  %s1476_s13 = sphi %s1558_s13, %s2127_s13   ;;  %s1472_s12 = sphi %s1556_s12, %s2126_s12   ;;  %s1468_s11 = sphi %s1554_s11, %s2125_s11  }
  0x19   : > { %s1009_s17 = sadd.s32 4294967294, %s1488_s15   ;;  %p68_p3 = scmp.ne.s32.totalorder %s1472_s12, %s1468_s11 }
  0x1a   : > { %p2081_p4 = scmp.eq.s32.totalorder %s1585_s16, 0  ;;  %p215_p6 = scmp.eq.s32.totalorder %s1009_s17, 1 }
  0x1b   : > { %p1010_p8 = scmp.ge.s32.totalorder %s1488_s15, 1  ;;  %p222_p10 = scmp.lt.s32.totalorder %s1488_s15, 3 }
  0x1c   : > { %p1594_p7 = por %p2081_p4, %p68_p3  ;;  %p1599_p9 = por %p215_p6, %p68_p3 }
  0x1d   : > { %p1604_p11 = pnand %p1010_p8, %p222_p10  ;;  %s1491_s21 = smov [#allocation9]  }
  0x1e   : > { %s2095_s18 = scalar_select %p1594_p7, 1, 0 }
  0x1f   : > { %s2096_s19 = scalar_select %p1599_p9, 1, 0 }
  0x20   : > { %s2098_s20 = scalar_select %p1604_p11, 1, 0 }
  0x21   : > { %2097 = sst [smem:[#allocation25_spill]] %s2096_s19  ;;  %s234_s22 = sshll.u32 %s1491_s21, 4  ;;  %s1608_s22 = int_to_ptr.vmem [resolvable:$true] %s234_s22 }
  0x22   : > { %p1077_p12 = pneg %p1604_p11  ;;  %s1492_s24 = smov [#allocation12]  }
  0x23   : > { %s248_s25 = sshll.u32 %s1492_s24, 4  ;;  %s1493_s26 = smov [#allocation13]   ;;  %s1619_s25 = int_to_ptr.vmem [resolvable:$true] %s248_s25 }
  0x24   : > { %p1615_p0 = pnand %p1077_p12, %p2081_p4  ;;  %s1621_s27 = sshll.u32 %s1493_s26, 4  ;;  %s260_s27 = int_to_ptr.vmem [resolvable:$true] %s1621_s27 }
  0x25   : > { %s2100_s3 = sld [smem:[#allocation27_spill]] }
  0x26   : > { %p1631_p2 = pneg %p1615_p0 }
  0x2b   : > { %s1210_s30 = scalar_lea.hbm %s2100_s3, 512 }
  0x2c   : > { %p1211_p1 = scmp.ne.s32.totalorder %s2100_s3, %s1210_s30  ;;  %p1217_p8 = scmp.lt.u32.totalorder %s1210_s30, %s2100_s3 }
  0x2e   : > { %p1213_p3 = pnand %p1631_p2, %p1211_p1 }
  0x30   : > { %p1214_p6 = pneg %p1213_p3 }
  0x32   : > { %p1219_p10 = pnand %p1217_p8, %p1214_p6 }
  0x34   : > { %1222 = shalt.err (!%p1219_p10)
}
  0x35   : > { %s1223_s24 = scalar_lea.vmem %s1608_s22, 512  ;;  %p1231_p5 = scmp.lt.s32.totalorder %s1608_s22, %s1608_s22 }
  0x36   : > { %p1224_p12 = scmp.ne.s32.totalorder %s1608_s22, %s1223_s24  ;;  %p1232_p9 = scmp.lt.s32.totalorder %s1223_s24, %s1223_s24 }
  0x38   : > { %p1226_p13 = pnand %p1224_p12, %p1631_p2  ;;  %p1233_p1 = por %p1232_p9, %p1231_p5 }
  0x3a   : > { %p1227_p4 = pneg %p1226_p13 }
  0x3c   : > { %p1234_p3 = pnand %p1233_p1, %p1227_p4 }
  0x3e   : > { %1237 = shalt.err (!%p1234_p3)
}
  0x3f   : > { %s2086_s26 = smov 128   ;;  %s2088_s28 = smov 8  }
  0x40   : > { %1080 = dma.hbm_to_vmem [thread:$0]  (!%p1615_p0), %s2100_s3, 512, %s1608_s22, [#allocation8], %s2086_s26, %s2086_s26, %s2088_s28  }
  0x41   : > { %s2102_s5 = sld [smem:[#allocation28_spill]] }
  0x47   : > { %s1238_s17 = scalar_lea.hbm %s2102_s5, 64 }
  0x48   : > { %p1239_p4 = scmp.ne.s32.totalorder %s2102_s5, %s1238_s17  ;;  %p1245_p13 = scmp.lt.u32.totalorder %s1238_s17, %s2102_s5 }
  0x4a   : > { %p1241_p5 = pnand %p1239_p4, %p1631_p2 }
  0x4c   : > { %p1242_p9 = pneg %p1241_p5 }
  0x4e   : > { %p1247_p6 = pnand %p1245_p13, %p1242_p9 }
  0x50   : > { %1250 = shalt.err (!%p1247_p6)
}
  0x51   : > { %s1251_s22 = scalar_lea.vmem %s1619_s25, 64  ;;  %p1259_p1 = scmp.lt.s32.totalorder %s1619_s25, %s1619_s25 }
  0x52   : > { %p1252_p8 = scmp.ne.s32.totalorder %s1619_s25, %s1251_s22  ;;  %p1260_p3 = scmp.lt.s32.totalorder %s1251_s22, %s1251_s22 }
  0x54   : > { %p1254_p10 = pnand %p1252_p8, %p1631_p2  ;;  %p1261_p4 = por %p1260_p3, %p1259_p1 }
  0x56   : > { %p1255_p12 = pneg %p1254_p10 }
  0x58   : > { %p1262_p5 = pnand %p1261_p4, %p1255_p12 }
  0x5a   : > { %1265 = shalt.err (!%p1262_p5)
}
  0x5b   : > { %1083 = dma.hbm_to_vmem [thread:$0]  (!%p1615_p0), %s2102_s5, 64, %s1619_s25, [#allocation11]  }
  0x5c   : > { %s1266_s8 = scalar_lea.hbm %s2079_s6, 64 }
  0x5d   : > { %p1267_p9 = scmp.ne.s32.totalorder %s2079_s6, %s1266_s8  ;;  %p1273_p8 = scmp.lt.u32.totalorder %s1266_s8, %s2079_s6 }
  0x5f   : > { %p1269_p13 = pnand %p1267_p9, %p1631_p2 }
  0x61   : > { %p1270_p6 = pneg %p1269_p13 }
  0x63   : > { %p1275_p10 = pnand %p1273_p8, %p1270_p6 }
  0x65   : > { %1278 = shalt.err (!%p1275_p10)
}
  0x66   : > { %s1279_s22 = scalar_lea.vmem %s260_s27, 64  ;;  %p1287_p4 = scmp.lt.s32.totalorder %s260_s27, %s260_s27 }
  0x67   : > { %p1280_p12 = scmp.ne.s32.totalorder %s260_s27, %s1279_s22  ;;  %p1288_p5 = scmp.lt.s32.totalorder %s1279_s22, %s1279_s22 }
  0x69   : > { %p1282_p1 = pnand %p1280_p12, %p1631_p2  ;;  %p1289_p7 = por %p1288_p5, %p1287_p4 }
  0x6b   : > { %p1283_p3 = pneg %p1282_p1 }
  0x6d   : > { %p1290_p11 = pnand %p1289_p7, %p1283_p3 }
  0x6f   : > { %1293 = shalt.err (!%p1290_p11)
}
  0x70   : > { %1086 = dma.hbm_to_vmem [thread:$0]  (!%p1615_p0), %s2079_s6, 64, %s260_s27, [#allocation14]  }
  0x71   : > { %s55_s10 = sadd.s32 1, %s1476_s13  ;;  %s46_s19 = sadd.s32 1, %s1484_s0 }
  0x72   : > { %p62_p7 = scmp.ne.s32.totalorder %s1476_s13, %s1472_s12  ;;  %p48_p11 = scmp.ge.s32.totalorder %s46_s19, 2 }
  0x73   : > { %p63_p2 = scmp.eq.s32.totalorder %s1488_s15, 0  ;;  %p2103_p9 = scmp.eq.s32.totalorder %s1585_s16, 1 }
  0x74   : > { %p1104_p6 = scmp.lt.s32.totalorder %s1488_s15, 2  ;;  %s2131_s19 = smov (%p48_p11, %s46_s19), 0 }
  0x75   : > { %p1704_p13 = por %p2103_p9, %p62_p7  ;;  %p64_p8 = por %p63_p2, %p62_p7 }
  0x76   : > { %s1712_s29 = sand.u32 1, %s1476_s13   ;;  %s50_s27 = ssub.s32 %s1484_s0, %s2131_s19 }
  0x77   : > { %s2104_s23 = scalar_select %p1704_p13, 1, 0 }
  0x78   : > { %p53_p0 = scmp.eq.s32.totalorder %s50_s27, 0  ;;  %s1015_s30 = sshll.u32 %s1712_s29, 3 }
  0x79   : > { %s1045_s8 = sshll.u32 %s1484_s0, 7  ;;  %s2105_s1 = sld [smem:[#allocation26_spill]] }
  0x7a   : > { %s1719_s9 = scalar_select %p53_p0, %s1476_s13, %s55_s10  }
  0x7b   : > { %s274_s22 = scalar_lea.vmem [#allocation4], %s1015_s30  ;;  %p1730_p10 = pnand %p1104_p6, %p64_p8 }
  0x7c   : > { %s284_s25 = sshll.u32 %s274_s22, 4  ;;  %s1018_s10 = sshll.u32 %s1712_s29, 5  ;;  %s1726_s25 = int_to_ptr.vmem [resolvable:$true] %s284_s25 }
  0x7d   : > { %s271_s26 = scalar_lea.sflag [#allocation5], %s1712_s29  ;;  %p1741_p1 = pneg %p1730_p10 }
  0x7f   : > { %s1724_s24 = scalar_lea.hbm %s2105_s1, %s1045_s8  ;;  %s1299_s22 = scalar_lea.hbm %s2105_s1, 256 }
  0x80   : > { %s1294_s17 = scalar_lea.hbm %s1724_s24, 128  ;;  %p1300_p5 = scmp.lt.u32.totalorder %s1724_s24, %s2105_s1 }
  0x81   : > { %p1295_p12 = scmp.ne.s32.totalorder %s1724_s24, %s1294_s17  ;;  %p1301_p7 = scmp.lt.u32.totalorder %s1299_s22, %s1294_s17 }
  0x82   : > { %p1303_p2 = scmp.lt.u32.totalorder %s1294_s17, %s1724_s24 }
  0x83   : > { %p1297_p3 = pnand %p1741_p1, %p1295_p12  ;;  %p1302_p11 = por %p1301_p7, %p1300_p5 }
  0x85   : > { %p1298_p4 = pneg %p1297_p3  ;;  %p1304_p9 = por %p1303_p2, %p1302_p11 }
  0x87   : > { %p1305_p6 = pnand %p1304_p9, %p1298_p4 }
  0x89   : > { %1308 = shalt.err (!%p1305_p6)
}
  0x8a   : > { %s1309_s27 = scalar_lea.vmem %s1726_s25, 128  ;;  %s1496_s30 = smov [#allocation4]  }
  0x8b   : > { %p1310_p8 = scmp.ne.s32.totalorder %s1726_s25, %s1309_s27  ;;  %s1314_s21 = sshll.u32 %s1496_s30, 4  ;;  %s1315_s21 = int_to_ptr.vmem [resolvable:$false] %s1314_s21 }
  0x8c   : > { %s1316_s3 = scalar_lea.vmem %s1315_s21, 256  ;;  %p1317_p3 = scmp.lt.s32.totalorder %s1726_s25, %s1315_s21 }
  0x8d   : > { %p1312_p0 = pnand %p1310_p8, %p1741_p1  ;;  %p1318_p13 = scmp.lt.s32.totalorder %s1316_s3, %s1309_s27 }
  0x8f   : > { %p1313_p12 = pneg %p1312_p0  ;;  %p1319_p5 = por %p1318_p13, %p1317_p3 }
  0x91   : > { %p1320_p7 = pnand %p1319_p5, %p1313_p12 }
  0x93   : > { %1323 = shalt.err (!%p1320_p7)
}
  0x94   : > { %1090 = dma.hbm_to_vmem [thread:$0]  (!%p1730_p10), %s1724_s24, 128, %s1726_s25, %s271_s26  }
  0x95   : > { %s295_s28 = scalar_lea.vmem [#allocation7], %s1018_s10  ;;  %s316_s27 = scalar_lea.vmem [#allocation10], %s1018_s10 }
  0x96   : > { %s302_s17 = sshll.u32 %s295_s28, 4  ;;  %s323_s22 = sshll.u32 %s316_s27, 4  ;;  %s1766_s17 = int_to_ptr.vmem [resolvable:$true] %s302_s17  ;;  %s1770_s22 = int_to_ptr.vmem [resolvable:$true] %s323_s22 }
  0x97   : > { %s291_s30 = sand.u32 1, %s1488_s15   ;;  %s2108_s21 = sshll.u32 %s1484_s0, 9 }
  0x98   : > { %s1778_s5 = scalar_lea.hbm %s2075_s2, %s2108_s21  ;;  %s1782_s26 = scalar_lea.sflag [#allocation8], %s291_s30 }
  0x99   : > { %s1324_s24 = scalar_lea.hbm %s1778_s5, 512  ;;  %s1329_s10 = scalar_lea.hbm %s2075_s2, 1024 }
  0x9a   : > { %p1325_p13 = scmp.ne.s32.totalorder %s1778_s5, %s1324_s24  ;;  %p1330_p2 = scmp.lt.u32.totalorder %s1778_s5, %s2075_s2 }
  0x9b   : > { %p1331_p9 = scmp.lt.u32.totalorder %s1329_s10, %s1324_s24  ;;  %p1333_p8 = scmp.lt.u32.totalorder %s1324_s24, %s1778_s5 }
  0x9c   : > { %p1327_p4 = pnand %p1325_p13, %p1741_p1 }
  0x9d   : > { %p1332_p6 = por %p1331_p9, %p1330_p2 }
  0x9e   : > { %p1328_p11 = pneg %p1327_p4 }
  0x9f   : > { %p1334_p0 = por %p1333_p8, %p1332_p6 }
  0xa1   : > { %p1335_p12 = pnand %p1334_p0, %p1328_p11 }
  0xa3   : > { %1338 = shalt.err (!%p1335_p12)
}
  0xa4   : > { %s1339_s27 = scalar_lea.vmem %s1766_s17, 512  ;;  %s1497_s21 = smov [#allocation7]  }
  0xa5   : > { %p1340_p3 = scmp.ne.s32.totalorder %s1766_s17, %s1339_s27  ;;  %s1344_s3 = sshll.u32 %s1497_s21, 4  ;;  %s1345_s3 = int_to_ptr.vmem [resolvable:$false] %s1344_s3 }
  0xa6   : > { %s1346_s29 = scalar_lea.vmem %s1345_s3, 1024  ;;  %p1347_p13 = scmp.lt.s32.totalorder %s1766_s17, %s1345_s3 }
  0xa7   : > { %p1342_p5 = pnand %p1340_p3, %p1741_p1  ;;  %p1348_p4 = scmp.lt.s32.totalorder %s1346_s29, %s1339_s27 }
  0xa9   : > { %p1343_p7 = pneg %p1342_p5  ;;  %p1349_p2 = por %p1348_p4, %p1347_p13 }
  0xab   : > { %p1350_p9 = pnand %p1349_p2, %p1343_p7 }
  0xad   : > { %1353 = shalt.err (!%p1350_p9)
}
  0xae   : > { %s2109_s24 = smov 8   ;;  %s2110_s25 = smov 128  }
  0xaf   : > { %1093 = dma.hbm_to_vmem [thread:$0]  (!%p1730_p10), %s1778_s5, 512, %s1766_s17, %s1782_s26, %s2110_s25, %s2110_s25, %s2109_s24  }
  0xb0   : > { %s2111_s10 = sshll.u32 %s1484_s0, 9  ;;  %s1818_s21 = scalar_lea.sflag [#allocation11], %s291_s30 }
  0xb1   : > { %s1814_s27 = scalar_lea.hbm %s2077_s4, %s2111_s10  ;;  %s1359_s17 = scalar_lea.hbm %s2077_s4, 1024 }
  0xb2   : > { %s1354_s3 = scalar_lea.hbm %s1814_s27, 512  ;;  %p1360_p0 = scmp.lt.u32.totalorder %s1814_s27, %s2077_s4 }
  0xb3   : > { %p1355_p11 = scmp.ne.s32.totalorder %s1814_s27, %s1354_s3  ;;  %p1361_p12 = scmp.lt.u32.totalorder %s1359_s17, %s1354_s3 }
  0xb4   : > { %p1363_p5 = scmp.lt.u32.totalorder %s1354_s3, %s1814_s27 }
  0xb5   : > { %p1357_p6 = pnand %p1355_p11, %p1741_p1  ;;  %p1362_p3 = por %p1361_p12, %p1360_p0 }
  0xb7   : > { %p1358_p8 = pneg %p1357_p6  ;;  %p1364_p7 = por %p1363_p5, %p1362_p3 }
  0xb9   : > { %p1365_p13 = pnand %p1364_p7, %p1358_p8 }
  0xbb   : > { %1368 = shalt.err (!%p1365_p13)
}
  0xbc   : > { %s1369_s30 = scalar_lea.vmem %s1770_s22, 512  ;;  %s1498_s10 = smov [#allocation10]  }
  0xbd   : > { %p1370_p4 = scmp.ne.s32.totalorder %s1770_s22, %s1369_s30  ;;  %s1374_s1 = sshll.u32 %s1498_s10, 4  ;;  %s1375_s1 = int_to_ptr.vmem [resolvable:$false] %s1374_s1 }
  0xbe   : > { %s1376_s29 = scalar_lea.vmem %s1375_s1, 1024  ;;  %p1377_p11 = scmp.lt.s32.totalorder %s1770_s22, %s1375_s1 }
  0xbf   : > { %p1372_p2 = pnand %p1370_p4, %p1741_p1  ;;  %p1378_p6 = scmp.lt.s32.totalorder %s1376_s29, %s1369_s30 }
  0xc1   : > { %p1373_p9 = pneg %p1372_p2  ;;  %p1379_p0 = por %p1378_p6, %p1377_p11 }
  0xc3   : > { %p1380_p12 = pnand %p1379_p0, %p1373_p9 }
  0xc5   : > { %1383 = shalt.err (!%p1380_p12)
}
  0xc6   : > { %1096 = dma.hbm_to_vmem [thread:$0]  (!%p1730_p10), %s1814_s27, 512, %s1770_s22, %s1818_s21, %s2110_s25, %s2110_s25, %s2109_s24  }
  0xc7   : > { %p2112_p1 = scmp.ne.s32.totalorder %s2098_s20, 0 }
  0xc8   : > { %s1848_s8 = sand.u32 (!%p2112_p1), 1, %s1472_s12   ;;  %p2113_p8 = scmp.ne.s32.totalorder (!%p2112_p1), %s2095_s18, 0 }
  0xc9   : > { %335 = sbr.rel (%p2112_p1) target bundleno = 734 (0x2de), region = 44  ;;  %s1025_s3 = sshll.u32 (!%p2112_p1), %s1848_s8, 3 }
  0xca   : > { %s338_s5 = scalar_lea.sflag (!%p2112_p1), [#allocation5], %s1848_s8  ;;  %s341_s11 = scalar_lea.vmem (!%p2112_p1), [#allocation4], %s1025_s3 }
  0xd0   : > { %1439 = dma.done.wait (%p2113_p8), %s338_s5, 128  }
  0xd1   : > { %1441 = vsyncadd (%p2113_p8), %s338_s5, 4294967168  ;;  %s346_s20 = sand.u32 1, %s1585_s16   ;;  %s1026_s22 = sshll.u32 %s1848_s8, 5 }
  0xd2   : > { %s347_s24 = scalar_lea.sflag [#allocation8], %s346_s20  ;;  %s1860_s25 = scalar_lea.vmem [#allocation7], %s1026_s22 }
  0xd3   : > { %1443 = dma.done.wait (%p2113_p8), %s347_s24, 512  }
  0xd4   : > { %1445 = vsyncadd (%p2113_p8), %s347_s24, 4294966784  ;;  %p2114_p10 = scmp.eq.s32.totalorder %s1585_s16, 0 }
  0xd6   : > { %1447 = dma.done.wait (%p2114_p10), [#allocation8], 512   ;;  %p2115_p3 = pmov %p2114_p10 }
  0xd7   : > { %s360_s27 = scalar_lea.sflag [#allocation11], %s346_s20  ;;  %s1870_s21 = scalar_lea.vmem [#allocation10], %s1026_s22 }
  0xd8   : > { %1449 = vsyncadd (%p2115_p3), [#allocation8], 4294966784 }
  0xd9   : > { %1451 = dma.done.wait (%p2113_p8), %s360_s27, 512  }
  0xda   : > { %1453 = vsyncadd (%p2113_p8), %s360_s27, 4294966784  ;;  %p2116_p5 = pmov %p2115_p3 }
  0xdb   : > { %p2117_p7 = pmov %p2115_p3 }
  0xdc   : > { %1455 = dma.done.wait (%p2116_p5), [#allocation11], 64  }
  0xdd   : > { %1457 = vsyncadd (%p2117_p7), [#allocation11], 4294967232  ;;  %p2118_p13 = pmov %p2115_p3 }
  0xde   : > { %p2119_p4 = pmov %p2115_p3 }
  0xdf   : > { %1459 = dma.done.wait (%p2118_p13), [#allocation14], 64  }
  0xe0   : > { %1461 = vsyncadd (%p2119_p4), [#allocation14], 4294967232  ;;  %v1499_v0 = vmov 0.0   ;;  %v1500_v1 = vmov 0   ;;  %v418_v2 = vld [vmem:[%s341_s11] sm:$0xff]  ;;  %vm434_vm0 = vcmask 1043456  }
  0xe1   : > { %503 = vmatprep.mubr.f32.mxu0 %v1499_v0  ;;  %1165 = vset.pattern.permute.xlu0 %v1500_v1  ;;  %v420_v3 = vcombine.high %v418_v2, %v418_v2  ;;  %v528_v4 = vld [vmem:[#allocation9] sm:$0xff]  ;;  %vm421_vm1 = vcmask 31744   ;;  %v529_v7 = vld [vmem:[#allocation9 + $0x8] sm:$0xff]  ;;  %v530_v10 = vld [vmem:[#allocation9 + $0x10] sm:$0xff]  ;;  %s412_s16 = sld [smem:[#allocation3]]  ;;  %s1032_s18 = sld [smem:[#allocation3 + $0x1]] }
  0xe2   : > { %1166 = vset.pattern.permute.xlu1 %v1500_v1  ;;  %821 = vmatprep.mubr.f32.mxu1 %v1499_v0  ;;  %v414_v5 = vld [vmem:[%s1860_s25] sm:$0xff]  ;;  %v561_v8 = vld [vmem:[%s1870_s21 + $0x8] sm:$0xff]  ;;  %v531_v11 = vld [vmem:[#allocation9 + $0x18] sm:$0xff]  ;;  %vm753_vm2 = vcmask 261120   ;;  %s1048_s17 = sshll.u32 %s1480_s14, 7  ;;  %s409_s26 = scalar_lea.vmem [#allocation15], %s1025_s3 }
  0xe3   : > { %534 = vperm.xlu0 %1165, %v528_v4   ;;  %v560_v6 = vld [vmem:[%s1870_s21] sm:$0xff]  ;;  %1033 = vmatprep.subr.msk.mxu0 %vm434_vm0, %v420_v3  ;;  %v415_v9 = vld [vmem:[%s1860_s25 + $0x8] sm:$0xff]  ;;  %v416_v12 = vld [vmem:[%s1860_s25 + $0x10] sm:$0xff]  ;;  %s850_s28 = sshll.u32 %s409_s26, 4  ;;  %s2024_s1 = scalar_lea.hbm %s2080_s7, %s1048_s17  ;;  %s2026_s28 = int_to_ptr.vmem [resolvable:$true] %s850_s28 }
  0xe4   : > { %566 = vperm.xlu1 %1166, %v560_v6   ;;  %1034 = vmatpush1.msk.msra.mxu0 %vm434_vm0, %v418_v2  ;;  %v562_v13 = vld [vmem:[%s1870_s21 + $0x10] sm:$0xff]  ;;  %v563_v14 = vld [vmem:[%s1870_s21 + $0x18] sm:$0xff]  ;;  %v747_v16 = vld [vmem:[#allocation13] sm:$0xf]  ;;  %s834_s29 = scalar_lea.sflag [#allocation6], %s1848_s8  ;;  %s1384_s5 = scalar_lea.vmem %s2026_s28, 128 }
  0xe5   : > { %1035 = vmatmul.mubr.msk.f32.vlgmr.msra.gmra.mrb[0].mxu0 %vm421_vm1, %v414_v5  ;;  %v417_v15 = vld [vmem:[%s1860_s25 + $0x18] sm:$0xff]  ;;  %p1385_p2 = scmp.ne.s32.totalorder %s2026_s28, %s1384_s5  ;;  %p2120_p9 = scmp.ne.s32.totalorder %s2104_s23, 0 }
  0xe6   : > { %509 = vmatprep.mubr.f32.mxu0 %v1499_v0  ;;  %s1501_s14 = smov [#allocation15]  }
  0xe7   : > { %539 = vperm.xlu0 %1165, %v529_v7   ;;  %p1386_p11 = pnand %p1385_p2, %p2120_p9  ;;  %s1388_s3 = sshll.u32 %s1501_s14, 4  ;;  %s1389_s3 = int_to_ptr.vmem [resolvable:$false] %s1388_s3 }
  0xe8   : > { %571 = vperm.xlu1 %1166, %v561_v8   ;;  %s1390_s11 = scalar_lea.vmem %s1389_s3, 256  ;;  %p1391_p0 = scmp.lt.s32.totalorder %s2026_s28, %s1389_s3 }
  0xe9   : > { %1036 = vmatmul.mubr.msk.f32.gmra.mrb[2].mxu0 %vm421_vm1, %v415_v9  ;;  %p1387_p6 = pneg %p1386_p11  ;;  %p1392_p12 = scmp.lt.s32.totalorder %s1390_s11, %s1384_s5 }
  0xea   : > { %515 = vmatprep.mubr.f32.mxu0 %v1499_v0 }
  0xeb   : > { %544 = vperm.xlu0 %1165, %v530_v10   ;;  %p1393_p1 = por %p1392_p12, %p1391_p0 }
  0xec   : > { %549 = vperm.xlu1 %1166, %v531_v11  }
  0xed   : > { %1037 = vmatmul.mubr.msk.f32.gmra.mrb[4].mxu0 %vm421_vm1, %v416_v12  ;;  %p1394_p8 = pnand %p1393_p1, %p1387_p6 }
  0xee   : > { %521 = vmatprep.mubr.f32.mxu0 %v1499_v0 }
  0xef   : > { %576 = vperm.xlu0 %1165, %v562_v13  }
  0xf0   : > { %581 = vperm.xlu1 %1166, %v563_v14  }
  0xf1   : > { %1038 = vmatmul.mubr.msk.f32.gmra.mrb[6].mxu0 %vm421_vm1, %v417_v15 }
  0xf3   : > { %750 = vperm.xlu0 %1165, %v747_v16  }
 0x162   : > { %v535_v17 = vpop.permute.xlu0 %534 }
 0x163   : > { %v567_v18 = vpop.permute.xlu1 %566 }
 0x166   : > { %v540_v19 = vpop.permute.xlu0 %539 }
 0x167   : > { %v572_v20 = vpop.permute.xlu1 %571 }
 0x16a   : > { %v545_v24 = vpop.permute.xlu0 %544 }
 0x16b   : > { %v550_v32 = vpop.permute.xlu1 %549 }
 0x16e   : > { %v577_v38 = vpop.permute.xlu0 %576 }
 0x16f   : > { %v582_v55 = vpop.permute.xlu1 %581 }
 0x1b8   : > { %v505_v21 = vpop.f32.mrb[0].mxu0 }
 0x1b9   : > { %v1896_v22 = vadd.f32 %v535_v17, %v505_v21  ;;  %v507_v23 = vpop.f32.mrb[1].mxu0  ;;  %v1898_v25 = vadd.f32 %v567_v18, %v505_v21 }
 0x1ba   : > { %v1900_v26 = vadd.f32 %v535_v17, %v507_v23  ;;  %v1902_v27 = vadd.f32 %v567_v18, %v507_v23 }
 0x1bb   : > { %v592_v28 = vmul.f32 0.044715, %v1896_v22  ;;  %v640_v33 = vmul.f32 0.044715, %v1898_v25 }
 0x1bc   : > { %v593_v29 = vmul.f32 0.044715, %v1900_v26  ;;  %v511_v30 = vpop.f32.mrb[2].mxu0  ;;  %v641_v35 = vmul.f32 0.044715, %v1902_v27 }
 0x1bd   : > { %v513_v31 = vpop.f32.mrb[3].mxu0  ;;  %v1910_v36 = vadd.f32 %v540_v19, %v511_v30  ;;  %v1912_v37 = vadd.f32 %v572_v20, %v511_v30  ;;  %v600_v39 = vmul.f32 %v592_v28, %v1896_v22  ;;  %v648_v46 = vmul.f32 %v640_v33, %v1898_v25 }
 0x1be   : > { %v1907_v34 = vadd.f32 %v540_v19, %v513_v31  ;;  %v601_v40 = vmul.f32 %v593_v29, %v1900_v26  ;;  %v1922_v47 = vadd.f32 %v572_v20, %v513_v31  ;;  %v649_v50 = vmul.f32 %v641_v35, %v1902_v27 }
 0x1bf   : > { %v594_v51 = vmul.f32 0.044715, %v1910_v36  ;;  %v642_v52 = vmul.f32 0.044715, %v1912_v37  ;;  %v608_v54 = vmul.f32 %v600_v39, %v1896_v22  ;;  %v656_v1 = vmul.f32 %v648_v46, %v1898_v25 }
 0x1c0   : > { %v517_v41 = vpop.f32.mrb[4].mxu0  ;;  %v595_v42 = vmul.f32 0.044715, %v1907_v34  ;;  %v609_v59 = vmul.f32 %v601_v40, %v1900_v26  ;;  %v643_v2 = vmul.f32 0.044715, %v1922_v47  ;;  %v657_v20 = vmul.f32 %v649_v50, %v1902_v27 }
 0x1c1   : > { %v1917_v43 = vadd.f32 %v545_v24, %v517_v41  ;;  %v1919_v44 = vadd.f32 %v577_v38, %v517_v41  ;;  %v519_v45 = vpop.f32.mrb[5].mxu0  ;;  %v602_v5 = vmul.f32 %v594_v51, %v1910_v36  ;;  %v650_v6 = vmul.f32 %v642_v52, %v1912_v37 }
 0x1c2   : > { %v1924_v48 = vadd.f32 %v545_v24, %v519_v45  ;;  %v1926_v49 = vadd.f32 %v577_v38, %v519_v45  ;;  %v603_v60 = vmul.f32 %v595_v42, %v1907_v34  ;;  %v617_v16 = vadd.f32 %v609_v59, %v1900_v26 }
 0x1c3   : > { %v596_v53 = vmul.f32 0.044715, %v1917_v43  ;;  %v644_v56 = vmul.f32 0.044715, %v1919_v44  ;;  %v651_v17 = vmul.f32 %v643_v2, %v1922_v47  ;;  %v610_v21 = vmul.f32 %v602_v5, %v1910_v36 }
 0x1c4   : > { %v597_v57 = vmul.f32 0.044715, %v1924_v48  ;;  %v523_v58 = vpop.f32.mrb[6].mxu0  ;;  %v645_v61 = vmul.f32 0.044715, %v1926_v49  ;;  %v611_v15 = vmul.f32 %v603_v60, %v1907_v34  ;;  %v658_v23 = vmul.f32 %v650_v6, %v1912_v37 }
 0x1c5   : > { %v1938_v62 = vadd.f32 %v550_v32, %v523_v58  ;;  %v1940_v63 = vadd.f32 %v582_v55, %v523_v58  ;;  %v525_v0 = vpop.f32.mrb[7].mxu0  ;;  %v604_v9 = vmul.f32 %v596_v53, %v1917_v43  ;;  %v652_v10 = vmul.f32 %v644_v56, %v1919_v44 }
 0x1c6   : > { %v1944_v3 = vadd.f32 %v550_v32, %v525_v0  ;;  %v1946_v4 = vadd.f32 %v582_v55, %v525_v0  ;;  %v605_v7 = vmul.f32 %v597_v57, %v1924_v48  ;;  %v653_v13 = vmul.f32 %v645_v61, %v1926_v49 }
 0x1c7   : > { %v598_v8 = vmul.f32 0.044715, %v1938_v62  ;;  %v646_v14 = vmul.f32 0.044715, %v1940_v63  ;;  %v612_v29 = vmul.f32 %v604_v9, %v1917_v43  ;;  %v660_v30 = vmul.f32 %v652_v10, %v1919_v44 }
 0x1c8   : > { %v599_v11 = vmul.f32 0.044715, %v1944_v3  ;;  %v647_v12 = vmul.f32 0.044715, %v1946_v4  ;;  %v613_v24 = vmul.f32 %v605_v7, %v1924_v48  ;;  %v661_v33 = vmul.f32 %v653_v13, %v1926_v49 }
 0x1c9   : > { %v606_v28 = vmul.f32 %v598_v8, %v1938_v62  ;;  %v654_v35 = vmul.f32 %v646_v14, %v1940_v63  ;;  %v619_v38 = vadd.f32 %v611_v15, %v1907_v34  ;;  %v625_v39 = vmul.f32 0.7978846, %v617_v16 }
 0x1ca   : > { %v607_v18 = vmul.f32 %v599_v11, %v1944_v3  ;;  %v655_v19 = vmul.f32 %v647_v12, %v1946_v4  ;;  %v659_v42 = vmul.f32 %v651_v17, %v1922_v47  ;;  %v665_v45 = vadd.f32 %v657_v20, %v1902_v27 }
 0x1cb   : > { %v621_v46 = vadd.f32 %v613_v24, %v1924_v48  ;;  %v614_v50 = vmul.f32 %v606_v28, %v1938_v62  ;;  %v627_v51 = vmul.f32 0.7978846, %v619_v38  ;;  %1168 = vtanh.f32 %v625_v39 }
 0x1cc   : > { %v615_v31 = vmul.f32 %v607_v18, %v1944_v3  ;;  %v663_v32 = vmul.f32 %v655_v19, %v1946_v4  ;;  %v667_v55 = vadd.f32 %v659_v42, %v1922_v47  ;;  %v673_v56 = vmul.f32 0.7978846, %v665_v45 }
 0x1cd   : > { %1170 = vtanh.f32 %v627_v51  ;;  %v616_v57 = vadd.f32 %v608_v54, %v1896_v22  ;;  %v618_v58 = vadd.f32 %v610_v21, %v1910_v36  ;;  %v664_v59 = vadd.f32 %v656_v1, %v1898_v25 }
 0x1ce   : > { %v623_v40 = vadd.f32 %v615_v31, %v1944_v3  ;;  %v671_v41 = vadd.f32 %v663_v32, %v1946_v4  ;;  %v669_v60 = vadd.f32 %v661_v33, %v1926_v49  ;;  %v675_v61 = vmul.f32 0.7978846, %v667_v55 }
 0x1cf   : > { %v666_v0 = vadd.f32 %v658_v23, %v1912_v37  ;;  %v662_v2 = vmul.f32 %v654_v35, %v1940_v63  ;;  %v624_v5 = vmul.f32 0.7978846, %v616_v57  ;;  %v626_v6 = vmul.f32 0.7978846, %v618_v58 }
 0x1d0   : > { %v631_v52 = vmul.f32 0.7978846, %v623_v40  ;;  %v679_v53 = vmul.f32 0.7978846, %v671_v41  ;;  %v620_v7 = vadd.f32 %v612_v29, %v1917_v43  ;;  %v672_v8 = vmul.f32 0.7978846, %v664_v59 }
 0x1d1   : > { %v622_v54 = vadd.f32 %v614_v50, %v1938_v62  ;;  %v674_v9 = vmul.f32 0.7978846, %v666_v0  ;;  %v668_v1 = vadd.f32 %v660_v30, %v1919_v44  ;;  %v629_v10 = vmul.f32 0.7978846, %v621_v46 }
 0x1d2   : > { %1172 = vtanh.f32 %v631_v52  ;;  %v677_v11 = vmul.f32 0.7978846, %v669_v60  ;;  %v670_v12 = vadd.f32 %v662_v2, %v1940_v63  ;;  %v628_v13 = vmul.f32 0.7978846, %v620_v7 }
 0x1d3   : > { %1174 = vtanh.f32 %v679_v53  ;;  %v630_v15 = vmul.f32 0.7978846, %v622_v54  ;;  %v676_v16 = vmul.f32 0.7978846, %v668_v1  ;;  %v1994_v31 = vstv %s412_s16 }
 0x1d4   : > { %1176 = vtanh.f32 %v673_v56  ;;  %v678_v19 = vmul.f32 0.7978846, %v670_v12  ;;  %v729_v41 = vstv %s1032_s18 }
 0x1d5   : > { %1178 = vtanh.f32 %v675_v61  ;;  %v1169_v14 = vpop.eup %1168 }
 0x1d6   : > { %1180 = vtanh.f32 %v624_v5  ;;  %v689_v17 = vadd.f32 1.0, %v1169_v14 }
 0x1d7   : > { %1182 = vtanh.f32 %v626_v6  ;;  %v1171_v18 = vpop.eup %1170 }
 0x1d8   : > { %1184 = vtanh.f32 %v672_v8  ;;  %v691_v21 = vadd.f32 1.0, %v1171_v18  ;;  %v697_v24 = vmul.f32 %v689_v17, %v1900_v26 }
 0x1d9   : > { %1186 = vtanh.f32 %v674_v9 }
 0x1da   : > { %1188 = vtanh.f32 %v629_v10  ;;  %v699_v30 = vmul.f32 %v691_v21, %v1907_v34  ;;  %v706_v45 = vmul.f32 %v1994_v31, %v697_v24 }
 0x1db   : > { %1190 = vtanh.f32 %v677_v11 }
 0x1dc   : > { %v1173_v20 = vpop.eup %1172  ;;  %1192 = vtanh.f32 %v628_v13  ;;  %v708_v51 = vmul.f32 %v1994_v31, %v699_v30 }
 0x1dd   : > { %v1175_v23 = vpop.eup %1174  ;;  %v695_v28 = vadd.f32 1.0, %v1173_v20  ;;  %1194 = vtanh.f32 %v630_v15 }
 0x1de   : > { %v1177_v29 = vpop.eup %1176  ;;  %v720_v32 = vadd.f32 1.0, %v1175_v23  ;;  %1196 = vtanh.f32 %v676_v16 }
 0x1df   : > { %v1179_v33 = vpop.eup %1178  ;;  %v714_v35 = vadd.f32 1.0, %v1177_v29  ;;  %v703_v38 = vmul.f32 %v695_v28, %v1944_v3  ;;  %1198 = vtanh.f32 %v678_v19 }
 0x1e0   : > { %v1181_v39 = vpop.eup %1180  ;;  %v716_v40 = vadd.f32 1.0, %v1179_v33  ;;  %v728_v42 = vmul.f32 %v720_v32, %v1946_v4 }
 0x1e1   : > { %v1183_v26 = vpop.eup %1182  ;;  %v722_v46 = vmul.f32 %v714_v35, %v1902_v27  ;;  %v688_v34 = vadd.f32 1.0, %v1181_v39  ;;  %v712_v3 = vmul.f32 %v1994_v31, %v703_v38 }
 0x1e2   : > { %v1185_v50 = vpop.eup %1184  ;;  %v724_v52 = vmul.f32 %v716_v40, %v1922_v47  ;;  %v690_v53 = vadd.f32 1.0, %v1183_v26  ;;  %v737_v4 = vmul.f32 %v729_v41, %v728_v42  ;;  %v746_v42 = vld [vmem:[#allocation12] sm:$0xf] }
 0x1e3   : > { %v1187_v55 = vpop.eup %1186  ;;  %v731_v56 = vmul.f32 %v729_v41, %v722_v46  ;;  %v696_v57 = vmul.f32 %v688_v34, %v1896_v22  ;;  %v713_v58 = vadd.f32 1.0, %v1185_v50 }
 0x1e4   : > { %v1189_v59 = vpop.eup %1188  ;;  %v733_v60 = vmul.f32 %v729_v41, %v724_v52  ;;  %v698_v61 = vmul.f32 %v690_v53, %v1910_v36  ;;  %v715_v27 = vadd.f32 1.0, %v1187_v55  ;;  %v745_v36 = vadd.f32 %v737_v4, %v712_v3 }
 0x1e5   : > { %v1191_v0 = vpop.eup %1190  ;;  %v739_v2 = vadd.f32 %v731_v56, %v706_v45  ;;  %v705_v5 = vmul.f32 %v1994_v31, %v696_v57  ;;  %v721_v47 = vmul.f32 %v713_v58, %v1898_v25  ;;  %v693_v6 = vadd.f32 1.0, %v1189_v59 }
 0x1e6   : > { %v1193_v7 = vpop.eup %1192  ;;  %v741_v8 = vadd.f32 %v733_v60, %v708_v51  ;;  %v707_v54 = vmul.f32 %v1994_v31, %v698_v61  ;;  %v723_v22 = vmul.f32 %v715_v27, %v1912_v37  ;;  %v718_v9 = vadd.f32 1.0, %v1191_v0 }
 0x1e7   : > { %v1195_v1 = vpop.eup %1194  ;;  %v730_v10 = vmul.f32 %v729_v41, %v721_v47  ;;  %v701_v11 = vmul.f32 %v693_v6, %v1924_v48  ;;  %v692_v12 = vadd.f32 1.0, %v1193_v7 }
 0x1e8   : > { %v1197_v13 = vpop.eup %1196  ;;  %v1049_v14 = vpack.c.bf16 %v741_v8, %v739_v2  ;;  %v732_v15 = vmul.f32 %v729_v41, %v723_v22  ;;  %v726_v16 = vmul.f32 %v718_v9, %v1926_v49  ;;  %v694_v25 = vadd.f32 1.0, %v1195_v1 }
 0x1e9   : > { %v1199_v17 = vpop.eup %1198  ;;  %v738_v18 = vadd.f32 %v730_v10, %v705_v5  ;;  %v710_v19 = vmul.f32 %v1994_v31, %v701_v11  ;;  %v700_v20 = vmul.f32 %v692_v12, %v1917_v43  ;;  %v717_v37 = vadd.f32 1.0, %v1197_v13 }
 0x1ea   : > { %1050 = vmatprep.subr.bf16.mxu1 %v1049_v14  ;;  %v740_v21 = vadd.f32 %v732_v15, %v707_v54  ;;  %v735_v23 = vmul.f32 %v729_v41, %v726_v16  ;;  %v702_v48 = vmul.f32 %v694_v25, %v1938_v62  ;;  %v719_v24 = vadd.f32 1.0, %v1199_v17 }
 0x1eb   : > { %v709_v28 = vmul.f32 %v1994_v31, %v700_v20  ;;  %v725_v29 = vmul.f32 %v717_v37, %v1919_v44  ;;  %v751_v44 = vpop.permute.xlu0 %750 }
 0x1ec   : > { %v1051_v30 = vpack.c.bf16 %v740_v21, %v738_v18  ;;  %v743_v49 = vadd.f32 %v735_v23, %v710_v19  ;;  %v711_v32 = vmul.f32 %v1994_v31, %v702_v48  ;;  %v727_v33 = vmul.f32 %v719_v24, %v1940_v63 }
 0x1ed   : > { %v734_v35 = vmul.f32 %v729_v41, %v725_v29 }
 0x1ee   : > { %1052 = vmatpush1.bf16.msra.mxu1 %v1051_v30  ;;  %v1053_v43 = vpack.c.bf16 %v745_v36, %v743_v49  ;;  %v736_v38 = vmul.f32 %v729_v41, %v727_v33 }
 0x1ef   : > { %v742_v39 = vadd.f32 %v734_v35, %v709_v28 }
 0x1f0   : > { %1054 = vmatprep.subr.bf16.mxu1 %v1053_v43  ;;  %v744_v62 = vadd.f32 %v736_v38, %v711_v32 }
 0x1f2   : > { %v1055_v40 = vpack.c.bf16 %v744_v62, %v742_v39 }
 0x1f4   : > { %1056 = vmatpush1.bf16.msra.mxu1 %v1055_v40 }
 0x1f7   : > { %1039 = vmatmul.mubr.msk.f32.vlgmr.msra.gmra.mrb[0].mxu1 %vm753_vm2, %v746_v42 }
 0x2ca   : > { %v823_v31 = vpop.f32.mrb[0].mxu1 }
 0x2cb   : > { %v824_v26 = vadd.f32 %v823_v31, %v751_v44  ;;  %v825_v63 = vpop.f32.mrb[1].mxu1 }
 0x2cc   : > { %v826_v45 = vadd.f32 %v825_v63, %v751_v44 }
 0x2ce   : > { %v830_v41 = vcombine.low %v824_v26, %v826_v45 }
 0x2d0   : > { %832 = vst [vmem:[%s409_s26] sm:$0xff] %v830_v41 }
 0x2d1   : > { %1397 = shalt.err (!%p1394_p8)
}
 0x2d2   : > { %s1398_s8 = scalar_lea.hbm %s2024_s1, 128  ;;  %s1402_s24 = scalar_lea.hbm %s2080_s7, 256 }
 0x2d3   : > { %p1399_p10 = scmp.ne.s32.totalorder %s2024_s1, %s1398_s8  ;;  %p1403_p7 = scmp.lt.u32.totalorder %s2024_s1, %s2080_s7 }
 0x2d4   : > { %p1404_p13 = scmp.lt.u32.totalorder %s1402_s24, %s1398_s8  ;;  %p1406_p2 = scmp.lt.u32.totalorder %s1398_s8, %s2024_s1 }
 0x2d5   : > { %p1400_p3 = pnand %p1399_p10, %p2120_p9 }
 0x2d6   : > { %p1405_p4 = por %p1404_p13, %p1403_p7 }
 0x2d7   : > { %p1401_p5 = pneg %p1400_p3 }
 0x2d8   : > { %p1407_p11 = por %p1406_p2, %p1405_p4 }
 0x2da   : > { %p1408_p6 = pnand %p1407_p11, %p1401_p5 }
 0x2dc   : > { %1411 = shalt.err (!%p1408_p6)
}
 0x2dd   : > { %1075 = dma.vmem_to_hbm [thread:$0]  (%p2120_p9), %s2026_s28, 128, %s2024_s1, %s834_s29  }
 0x2de PF: > { %s2121_s21 = sld [smem:[#allocation24_spill]]  ;;  %s2122_s16 = sld [smem:[#allocation25_spill]] }
 0x2df   : > { %p2124_p12 = scmp.ge.s32.totalorder %s1488_s15, 2 }
 0x2e4   : > { %s862_s18 = sand.u32 1, %s2121_s21   ;;  %p2123_p0 = scmp.ne.s32.totalorder %s2122_s16, 0 }
 0x2e5   : > { %s863_s17 = scalar_lea.sflag [#allocation6], %s862_s18 }
 0x2e6   : > { %p1098_p1 = pnand %p2124_p12, %p2123_p0 }
 0x2e8   : > { %1463 = dma.done.wait (!%p1098_p1), %s863_s17, 128  }
 0x2e9   : > { %1465 = vsyncadd (!%p1098_p1), %s863_s17, 4294967168  ;;  %s34_s15 = sadd.s32 1, %s1488_s15   ;;  %s2125_s11 = smov %s1472_s12 }
 0x2ea   : > { %p31_p8 = scmp.ge.s32.totalorder %s34_s15, 4   ;;  %s2126_s12 = smov %s1476_s13 }
 0x2eb   : > { %s2127_s13 = smov %s1719_s9  ;;  %s2128_s14 = smov %s1484_s0 }
 0x2ec   : > { %s2129_s0 = smov %s2131_s19  ;;  %33 = sbr.rel (!%p31_p8) target bundleno = 24 (0x18), region = 127 }
 0x2f3   :  { %868 = vsyncpa [#allocation5], 1 }
 0x2f4   :  { %870 = vsyncpa [#allocation5 + $0x1], 1 }
 0x2f5   :  { %871 = vsyncpa [#allocation8], 1 }
 0x2f6   :  { %873 = vsyncpa [#allocation8 + $0x1], 1 }
 0x2f7   :  { %874 = vsyncpa [#allocation11], 1 }
 0x2f8   :  { %876 = vsyncpa [#allocation11 + $0x1], 1 }
 0x2f9   :  { %877 = vsyncpa [#allocation14], 1 }
 0x2fa   :  { %878 = vsyncpa [#allocation6], 1 }
 0x2fb   :  { %880 = vsyncpa [#allocation6 + $0x1], 1 }

</bundles_post_ra>
